<compile_context>
chip_gen: v7x
topology: tpu7x:2x2x1
jax: 0.10.0
libtpu: 0.0.40
codegen_flags: <defaults>
</compile_context>

<pallas_src>
import jax
import jax.numpy as jnp
from jax.experimental import pallas as pl
from jax.experimental.pallas import tpu as pltpu


# ---------------------------------------------------------------------------
# Kernels
# ---------------------------------------------------------------------------

def _fused_kernel(w_ref, u_ref, out_ref, u_out_ref, sigma_ref):
    """Single-block path: W resident in VMEM; compute sigma/u_new then scale."""
    eps = jnp.float32(1e-12)
    w = w_ref[...].astype(jnp.float32)                       # in-register upcast
    u = u_ref[...]                                           # (1, D) float32

    v = jnp.sum(w * u, axis=1, keepdims=True)                # (C, 1) = W @ u
    t = jnp.sum(w * v, axis=0, keepdims=True)                # (1, D) = W^T (W u)
    v_norm = jnp.maximum(jnp.sqrt(jnp.sum(v * v, keepdims=True)), eps)   # (1,1)
    t_norm = jnp.sqrt(jnp.sum(t * t, keepdims=True))                     # (1,1)
    # Identity: sigma = v^T W u_new == ||W^T v||  -> no second traversal of W.
    sigma = t_norm / v_norm
    u_norm = jnp.maximum(sigma, eps)

    u_out_ref[...] = t / (v_norm * u_norm)                   # == normalize(W^T v)
    sigma_ref[...] = sigma
    inv_sigma = jnp.float32(1.0) / sigma                     # exact divide, once
    out_ref[...] = (w * inv_sigma).astype(out_ref.dtype)


def _power_iter_kernel(w_ref, u_ref, u_out_ref, sigma_ref, inv_sigma_ref,
                       t_acc, vsq_acc):
    """Pass 1: sweep row tiles of W, accumulate t = W^T (W u) and ||W u||^2,
    then finalize sigma = ||W^T v||, u_new, and 1/sigma."""
    i = pl.program_id(0)

    @pl.when(i == 0)
    def _init():
        t_acc[...] = jnp.zeros_like(t_acc)
        vsq_acc[...] = jnp.zeros_like(vsq_acc)

    w = w_ref[...].astype(jnp.float32)                       # (tm, D)
    u = u_ref[...]                                           # (1, D) float32

    v = jnp.sum(w * u, axis=1, keepdims=True)                # (tm, 1): W_tile @ u
    t_acc[...] += jnp.sum(w * v, axis=0, keepdims=True)      # (1, D):  += W_tile^T v
    vsq_acc[...] += jnp.sum(v * v, keepdims=True)            # (1, 1)

    @pl.when(i == pl.num_programs(0) - 1)
    def _finalize():
        eps = jnp.float32(1e-12)
        t = t_acc[...]                                       # (1, D) == W^T (W u)
        v_norm = jnp.maximum(jnp.sqrt(vsq_acc[...]), eps)    # max(||W u||, eps)
        # Note: t*t scales like sigma^4; f32 accumulation assumed sufficient here.
        t_norm = jnp.sqrt(jnp.sum(t * t, keepdims=True))     # ||W^T (W u)||
        sigma = t_norm / v_norm
        u_norm = jnp.maximum(sigma, eps)
        u_out_ref[...] = t / (v_norm * u_norm)               # == normalize(W^T v)
        sigma_ref[...] = sigma
        inv_sigma_ref[...] = jnp.float32(1.0) / sigma


def _scale_kernel(inv_sigma_ref, w_ref, out_ref):
    """Pass 2: out = W * (1/sigma); inv_sigma is an SMEM scalar, pure stream."""
    inv = inv_sigma_ref[0, 0]                                # f32 scalar from SMEM
    w = w_ref[...]
    if w.dtype == jnp.bfloat16:
        # Direct bf16 multiply (1 VPU op/elem); Mosaic upcasts internally on v5e.
        out_ref[...] = w * inv.astype(jnp.bfloat16)
    else:
        out_ref[...] = (w.astype(jnp.float32) * inv).astype(out_ref.dtype)


# ---------------------------------------------------------------------------
# Tiling helpers
# ---------------------------------------------------------------------------

def _vmem_limit_bytes():
    """Chip-aware scoped-VMEM limit (with safe fallback)."""
    try:
        cap = pltpu.get_tpu_info().vmem_capacity_bytes
    except Exception:
        cap = 32 << 20
    # Leave headroom for compiler-internal scratch; stays below physical on v7x.
    return int(min(max(cap, 32 << 20) * 3 // 4, 96 << 20))


def _row_granularity(itemsize):
    """Sublane packing: 8 rows/vreg for f32, 16 for bf16, 32 for int8/fp8."""
    return max(8, 32 // max(itemsize, 1))


def _choose_row_tile(n_rows, n_cols, itemsize, gran, target_bytes):
    """Largest row tile that divides n_rows, is a multiple of `gran`, and keeps a
    (tile, n_cols) block under target_bytes.  Falls back to the full row count
    (always a legal block shape)."""
    max_rows = max(gran, target_bytes // max(n_cols * itemsize, 1))
    if n_rows <= max_rows:
        return n_rows
    best = None
    for t in range(gran, n_rows, gran):
        if t > max_rows:
            break
        if n_rows % t == 0:
            best = t
    return best if best is not None else n_rows


# ---------------------------------------------------------------------------
# Wrapper
# ---------------------------------------------------------------------------

def spectral_normed_weight(weight: jax.Array, u: jax.Array, *,
                           row_tile=None, fused=None):
    """Training-mode forward of SpectralNormedWeight.

    Returns (weight / sigma, sigma, u_new); sigma / u_new correspond to the
    module's `spectral_norm` / `u` buffer updates.
    """
    C, D = weight.shape
    u2 = u.reshape(1, D).astype(jnp.float32)
    itemsize = jnp.dtype(weight.dtype).itemsize
    vmem_limit = _vmem_limit_bytes()

    if fused is None:
        # Fused working set ~ in(W) + out(W) + f32 copy of W (+ headroom x2).
        fused = C * D * (2 * itemsize + 8) <= vmem_limit // 2

    if fused:
        w_out, u_new, sigma = pl.pallas_call(
            _fused_kernel,
            out_shape=(
                jax.ShapeDtypeStruct((C, D), weight.dtype),
                jax.ShapeDtypeStruct((1, D), jnp.float32),
                jax.ShapeDtypeStruct((1, 1), jnp.float32),
            ),
            compiler_params=pltpu.CompilerParams(vmem_limit_bytes=vmem_limit),
        )(weight, u2)
        return w_out, sigma[0, 0], u_new.reshape(D)

    # ---- Tiled two-pass path ------------------------------------------------
    gran = _row_granularity(itemsize)
    if row_tile is not None:
        if C % row_tile != 0 or row_tile % gran != 0:
            raise ValueError(
                f"row_tile={row_tile} must divide C={C} and be a multiple of "
                f"{gran} for dtype {weight.dtype}")
        row_tile_1 = row_tile_2 = row_tile
    else:
        # Pass 1 only double-buffers W; pass 2 double-buffers W in + out.
        row_tile_1 = _choose_row_tile(C, D, itemsize, gran,
                                      min(8 << 20, vmem_limit // 4))
        row_tile_2 = _choose_row_tile(C, D, itemsize, gran,
                                      min(4 << 20, vmem_limit // 6))

    # Pass 1: sequential reduction over row tiles (single HBM read of W).
    u_new, sigma, inv_sigma = pl.pallas_call(
        _power_iter_kernel,
        grid_spec=pltpu.PrefetchScalarGridSpec(
            num_scalar_prefetch=0,
            grid=(C // row_tile_1,),
            in_specs=[
                pl.BlockSpec((row_tile_1, D), lambda i: (i, 0)),   # W row tile
                pl.BlockSpec((1, D), lambda i: (0, 0)),            # u (resident)
            ],
            out_specs=(
                pl.BlockSpec((1, D), lambda i: (0, 0)),            # u_new
                pl.BlockSpec((1, 1), lambda i: (0, 0)),            # sigma
                pl.BlockSpec((1, 1), lambda i: (0, 0)),            # 1 / sigma
            ),
            scratch_shapes=[
                pltpu.VMEM((1, D), jnp.float32),                   # t accumulator
                pltpu.VMEM((1, 1), jnp.float32),                   # ||W u||^2
            ],
        ),
        out_shape=(
            jax.ShapeDtypeStruct((1, D), jnp.float32),
            jax.ShapeDtypeStruct((1, 1), jnp.float32),
            jax.ShapeDtypeStruct((1, 1), jnp.float32),
        ),
        compiler_params=pltpu.CompilerParams(
            dimension_semantics=("arbitrary",),
            vmem_limit_bytes=vmem_limit),
    )(weight, u2)

    # Pass 2: parallel row-tiled scale  out = W * (1 / sigma), sigma in SMEM.
    w_out = pl.pallas_call(
        _scale_kernel,
        grid_spec=pltpu.PrefetchScalarGridSpec(
            num_scalar_prefetch=0,
            grid=(C // row_tile_2,),
            in_specs=[
                pl.BlockSpec(memory_space=pltpu.MemorySpace.SMEM), # 1/sigma scalar
                pl.BlockSpec((row_tile_2, D), lambda i: (i, 0)),   # W row tile
            ],
            out_specs=pl.BlockSpec((row_tile_2, D), lambda i: (i, 0)),
        ),
        out_shape=jax.ShapeDtypeStruct((C, D), weight.dtype),
        compiler_params=pltpu.CompilerParams(
            dimension_semantics=("parallel",),
            vmem_limit_bytes=vmem_limit),
    )(inv_sigma, weight)

    return w_out, sigma[0, 0], u_new.reshape(D)


# ---------------------------------------------------------------------------
# Reference & demo
# ---------------------------------------------------------------------------

def _reference(weight, u):
    """Pure-JAX reference of the PyTorch forward (training mode)."""
    eps = 1e-12
    hp = jax.lax.Precision.HIGHEST
    v = jnp.matmul(weight, u, precision=hp)
    v = v / jnp.maximum(jnp.linalg.norm(v), eps)
    u_new = jnp.matmul(weight.T, v, precision=hp)
    u_new = u_new / jnp.maximum(jnp.linalg.norm(u_new), eps)
    sigma = jnp.einsum("c,cd,d->", v, weight, u_new, precision=hp)
    return weight / sigma, sigma, u_new


if __name__ == "__main__":
    key = jax.random.PRNGKey(0)
    # Small weight playing the role of nn.Linear.weight (out_features, in_features).
    # D is a multiple of 128 (lane-dense); C=64 keeps everything tiny.
    C, D = 64, 128
    weight = jax.random.normal(key, (C, D), dtype=jnp.float32)

    # __init__ buffers: u = vh[0] of SVD(W), spectral_norm = s[0]  (plain-JAX glue).
    _, s, vh = jnp.linalg.svd(weight, full_matrices=False)
    u0 = vh[0]
    spectral_norm0 = s[0]  # noqa: F841  (kept for parity with the module's buffer)

    w_ref, sigma_ref, u_ref = _reference(weight, u0)

    # 1) Fused single-pass path (W fits in VMEM -> default for this size).
    w_normed, sigma, u_new = spectral_normed_weight(weight, u0)
    jax.block_until_ready((w_normed, sigma, u_new))
    assert jnp.allclose(w_normed, w_ref, atol=1e-5, rtol=1e-5)
    assert jnp.allclose(sigma, sigma_ref, atol=1e-5, rtol=1e-5)
    assert jnp.allclose(u_new, u_ref, atol=1e-5, rtol=1e-5)

    # 2) Tiled two-pass path (forced), exercising the row-tiled reduction,
    #    accumulator init/finalize, and the SMEM-scalar scale pass.
    w_t, sigma_t, u_t = spectral_normed_weight(weight, u0, row_tile=16, fused=False)
    jax.block_until_ready((w_t, sigma_t, u_t))
    assert jnp.allclose(w_t, w_ref, atol=1e-5, rtol=1e-5)
    assert jnp.allclose(sigma_t, sigma_ref, atol=1e-5, rtol=1e-5)
    assert jnp.allclose(u_t, u_ref, atol=1e-5, rtol=1e-5)

    print("KERNEL_OK")
</pallas_src>

<mosaic_0001>
module attributes {stable_mosaic.version = 11 : i64} {
  func.func @_fused_kernel(%arg0: memref<64x128xf32, #tpu.memory_space<vmem>>, %arg1: memref<1x128xf32, #tpu.memory_space<vmem>>, %arg2: memref<64x128xf32, #tpu.memory_space<vmem>>, %arg3: memref<1x128xf32, #tpu.memory_space<vmem>>, %arg4: memref<1x1xf32, #tpu.memory_space<vmem>>) attributes {dimension_semantics = [], scalar_prefetch = 0 : i64, scratch_operands = 0 : i64, tpu.core_type = #tpu.core_type<tc>} {
    %c0 = arith.constant 0 : index
    %c0_0 = arith.constant 0 : index
    %0 = vector.load %arg0[%c0, %c0_0] : memref<64x128xf32, #tpu.memory_space<vmem>>, vector<64x128xf32>
    %c0_1 = arith.constant 0 : index
    %c0_2 = arith.constant 0 : index
    %1 = vector.load %arg1[%c0_1, %c0_2] : memref<1x128xf32, #tpu.memory_space<vmem>>, vector<1x128xf32>
    %2 = vector.broadcast %1 : vector<1x128xf32> to vector<64x128xf32>
    %3 = arith.mulf %0, %2 : vector<64x128xf32>
    %cst = arith.constant dense<0.000000e+00> : vector<64xf32>
    %4 = vector.multi_reduction <add>, %3, %cst [1] : vector<64x128xf32> to vector<64xf32>
    %5 = vector.shape_cast %4 : vector<64xf32> to vector<64x1xf32>
    %6 = vector.broadcast %5 : vector<64x1xf32> to vector<64x128xf32>
    %7 = arith.mulf %0, %6 : vector<64x128xf32>
    %cst_3 = arith.constant dense<0.000000e+00> : vector<128xf32>
    %8 = vector.multi_reduction <add>, %7, %cst_3 [0] : vector<64x128xf32> to vector<128xf32>
    %9 = vector.shape_cast %8 : vector<128xf32> to vector<1x128xf32>
    %10 = arith.mulf %5, %5 : vector<64x1xf32>
    %11 = vector.shape_cast %10 : vector<64x1xf32> to vector<1x64x1xf32>
    %cst_4 = arith.constant dense<0.000000e+00> : vector<1xf32>
    %12 = vector.multi_reduction <add>, %11, %cst_4 [1, 2] : vector<1x64x1xf32> to vector<1xf32>
    %13 = vector.shape_cast %12 : vector<1xf32> to vector<1x1x1xf32>
    %14 = vector.extract %13[0, 0, 0] : f32 from vector<1x1x1xf32>
    %15 = vector.broadcast %14 : f32 to vector<1x1xf32>
    %16 = math.sqrt %15 : vector<1x1xf32>
    %cst_5 = arith.constant 9.99999996E-13 : f32
    %17 = vector.broadcast %cst_5 : f32 to vector<1x1xf32>
    %18 = arith.maximumf %16, %17 : vector<1x1xf32>
    %19 = arith.mulf %9, %9 : vector<1x128xf32>
    %20 = vector.shape_cast %19 : vector<1x128xf32> to vector<1x1x128xf32>
    %cst_6 = arith.constant dense<0.000000e+00> : vector<1xf32>
    %21 = vector.multi_reduction <add>, %20, %cst_6 [1, 2] : vector<1x1x128xf32> to vector<1xf32>
    %22 = vector.shape_cast %21 : vector<1xf32> to vector<1x1x1xf32>
    %23 = vector.extract %22[0, 0, 0] : f32 from vector<1x1x1xf32>
    %24 = vector.broadcast %23 : f32 to vector<1x1xf32>
    %25 = math.sqrt %24 : vector<1x1xf32>
    %26 = arith.divf %25, %18 : vector<1x1xf32>
    %cst_7 = arith.constant 9.99999996E-13 : f32
    %27 = vector.broadcast %cst_7 : f32 to vector<1x1xf32>
    %28 = arith.maximumf %26, %27 : vector<1x1xf32>
    %29 = arith.mulf %18, %28 : vector<1x1xf32>
    %30 = vector.broadcast %29 : vector<1x1xf32> to vector<1x128xf32>
    %31 = arith.divf %9, %30 : vector<1x128xf32>
    %c0_8 = arith.constant 0 : index
    %c0_9 = arith.constant 0 : index
    %32 = vector.load %arg3[%c0_8, %c0_9] : memref<1x128xf32, #tpu.memory_space<vmem>>, vector<1x128xf32>
    tpu.vector_store %arg3[%c0_8, %c0_9], %31 {strides = array<i32>} : memref<1x128xf32, #tpu.memory_space<vmem>>, vector<1x128xf32>,
    %c0_10 = arith.constant 0 : index
    %c0_11 = arith.constant 0 : index
    %33 = vector.load %arg4[%c0_10, %c0_11] : memref<1x1xf32, #tpu.memory_space<vmem>>, vector<1x1xf32>
    tpu.vector_store %arg4[%c0_10, %c0_11], %26 {strides = array<i32>} : memref<1x1xf32, #tpu.memory_space<vmem>>, vector<1x1xf32>,
    %cst_12 = arith.constant 1.000000e+00 : f32
    %34 = vector.broadcast %cst_12 : f32 to vector<1x1xf32>
    %35 = arith.divf %34, %26 : vector<1x1xf32>
    %36 = vector.broadcast %35 : vector<1x1xf32> to vector<64x128xf32>
    %37 = arith.mulf %0, %36 : vector<64x128xf32>
    %c0_13 = arith.constant 0 : index
    %c0_14 = arith.constant 0 : index
    %38 = vector.load %arg2[%c0_13, %c0_14] : memref<64x128xf32, #tpu.memory_space<vmem>>, vector<64x128xf32>
    tpu.vector_store %arg2[%c0_13, %c0_14], %37 {strides = array<i32>} : memref<64x128xf32, #tpu.memory_space<vmem>>, vector<64x128xf32>,
    return
  }
}

</mosaic_0001>

<bundles_post_ra>
// kernel: tpu_custom_call.1
= control target key start
LH: loop header
LB: loop body
LE: loop exit
PB: predicated region body
PF: predicated region fallthrough
CT: control target
= control target key end

     0   :  { %10 = vsyncpa [#allocation3], 0  ;;  %s502_s0 = inlined_call_operand.hbm [shape: f32[64,128], index: 0, kind: input, shape index: {}]   ;;  %s503_s1 = inlined_call_operand.vmem [shape: f32[1,128], index: 1, kind: input, shape index: {}]   ;;  %s504_s2 = inlined_call_operand.hbm [shape: f32[64,128], index: 2, kind: output, shape index: {0}]   ;;  %s505_s3 = inlined_call_operand.hbm [shape: f32[1,128], index: 3, kind: output, shape index: {1}]   ;;  %s506_s4 = inlined_call_operand.hbm [shape: f32[1,1], index: 4, kind: output, shape index: {2}]  }
   0x1   :  { %11 = vsyncpa [#allocation4], 0 }
   0x2   :  { %12 = vsyncpa [#allocation7], 0  ;;  %s338_s15 = smov [#allocation2]   ;;  %s244_s19 = scalar_lea.hbm %s502_s0, 1024 }
   0x3   :  { %s18_s16 = sshll.u32 %s338_s15, 4  ;;  %p245_p0 = scmp.ne.s32.totalorder %s502_s0, %s244_s19  ;;  %s19_s16 = int_to_ptr.vmem [resolvable:$true] %s18_s16 }
   0x4   :  { %p248_p1 = scmp.lt.u32.totalorder %s244_s19, %s502_s0 }
   0x6   :  { %p250_p2 = pnand %p248_p1, %p245_p0 }
   0x8   :  { %253 = shalt.err (!%p250_p2)
}
   0x9   :  { %s254_s24 = scalar_lea.vmem %s19_s16, 1024  ;;  %p259_p4 = scmp.lt.s32.totalorder %s19_s16, %s19_s16 }
   0xa   :  { %p255_p3 = scmp.ne.s32.totalorder %s19_s16, %s254_s24  ;;  %p260_p5 = scmp.lt.s32.totalorder %s254_s24, %s254_s24 }
   0xc   :  { %p261_p6 = por %p260_p5, %p259_p4 }
   0xe   :  { %p262_p7 = pnand %p261_p6, %p255_p3 }
  0x10   :  { %265 = shalt.err (!%p262_p7)
}
  0x11   :  { %s339_s25 = smov 128   ;;  %s340_s26 = smov 8  }
  0x12   :  { %24 = dma.hbm_to_vmem [thread:$0]  %s502_s0, 1024, %s19_s16, [#allocation3], %s339_s25, %s339_s25, %s340_s26  }
  0x13   :  { %332 = dma.done.wait [#allocation3], 1024  }
  0x14   :  { %333 = vsyncadd [#allocation3], 4294966272  ;;  %v384_v0 = vld [vmem:[#allocation2] sm:$0xff]  ;;  %v389_v2 = vld [vmem:[#allocation2 + $0x10] sm:$0xff]  ;;  %vm98_vm0 = vcmask 7168   ;;  %vm133_vm1 = vcmask 1040384  }
  0x15   :  { %v223_v1 = vld [vmem:[%s503_s1] ss:$0 sm:$0xff]  ;;  %v393_v5 = vld [vmem:[#allocation2 + $0x8] sm:$0xff]  ;;  %v395_v6 = vld [vmem:[#allocation2 + $0x18] sm:$0xff]  ;;  %vm159_vm6 = vcmask 0   ;;  %s341_s5 = smov [#allocation5]  }
  0x16   :  { %v45_v3 = vmul.f32 %v223_v1, %v384_v0  ;;  %v47_v4 = vmul.f32 %v223_v1, %v389_v2  ;;  %v46_v7 = vmul.f32 %v223_v1, %v393_v5  ;;  %v48_v8 = vmul.f32 %v223_v1, %v395_v6  ;;  %v399_v9 = vld [vmem:[#allocation2 + $0x20] sm:$0xff]  ;;  %v401_v10 = vld [vmem:[#allocation2 + $0x28] sm:$0xff]  ;;  %v405_v13 = vld [vmem:[#allocation2 + $0x30] sm:$0xff]  ;;  %s184_s6 = sshll.u32 %s341_s5, 4  ;;  %s342_s7 = smov [#allocation6]   ;;  %s439_s6 = int_to_ptr.vmem [resolvable:$true] %s184_s6 }
  0x17   :  { %v49_v11 = vmul.f32 %v223_v1, %v399_v9  ;;  %v50_v12 = vmul.f32 %v223_v1, %v401_v10  ;;  %v407_v14 = vld [vmem:[#allocation2 + $0x38] sm:$0xff]  ;;  %v51_v15 = vmul.f32 %v223_v1, %v405_v13  ;;  %s197_s8 = sshll.u32 %s342_s7, 4  ;;  %s343_s9 = smov [#allocation8]   ;;  %s441_s8 = int_to_ptr.vmem [resolvable:$true] %s197_s8 }
  0x18   :  { %53 = vadd.xlane.f32.xlu0 %v45_v3  ;;  %57 = vadd.xlane.f32.xlu1 %v47_v4  ;;  %v52_v16 = vmul.f32 %v223_v1, %v407_v14  ;;  %s207_s10 = sshll.u32 %s343_s9, 4  ;;  %s266_s11 = scalar_lea.vmem %s439_s6, 1024  ;;  %s464_s10 = int_to_ptr.vmem [resolvable:$true] %s207_s10 }
  0x19   :  { %p267_p8 = scmp.ne.s32.totalorder %s439_s6, %s266_s11  ;;  %p271_p9 = scmp.lt.s32.totalorder %s439_s6, %s439_s6 }
  0x1a   :  { %p272_p10 = scmp.lt.s32.totalorder %s266_s11, %s266_s11 }
  0x1c   :  { %55 = vadd.xlane.f32.xlu0 %v46_v7  ;;  %59 = vadd.xlane.f32.xlu1 %v48_v8  ;;  %p273_p11 = por %p272_p10, %p271_p9 }
  0x1e   :  { %p274_p12 = pnand %p273_p11, %p267_p8 }
  0x20   :  { %61 = vadd.xlane.f32.xlu0 %v49_v11  ;;  %63 = vadd.xlane.f32.xlu1 %v50_v12 }
  0x24   :  { %65 = vadd.xlane.f32.xlu0 %v51_v15  ;;  %67 = vadd.xlane.f32.xlu1 %v52_v16 }
  0xa5   :  { %v54_v17 = vpop.xlane.xlu0 %53  ;;  %v58_v18 = vpop.xlane.xlu1 %57 }
  0xa6   :  { %v90_v19 = vmul.f32 %v54_v17, %v54_v17  ;;  %v92_v20 = vmul.f32 %v58_v18, %v58_v18  ;;  %v69_v23 = vmul.f32 %v54_v17, %v384_v0  ;;  %v71_v27 = vmul.f32 %v58_v18, %v389_v2 }
  0xa8   :  { %v99_v28 = vsel %vm98_vm0, %v90_v19, 0.0  ;;  %v102_v32 = vsel %vm98_vm0, %v92_v20, 0.0 }
  0xa9   :  { %v56_v21 = vpop.xlane.xlu0 %55  ;;  %v60_v22 = vpop.xlane.xlu1 %59 }
  0xaa   :  { %v70_v24 = vmul.f32 %v56_v21, %v393_v5  ;;  %v91_v25 = vmul.f32 %v56_v21, %v56_v21  ;;  %v93_v26 = vmul.f32 %v60_v22, %v60_v22  ;;  %v72_v31 = vmul.f32 %v60_v22, %v395_v6 }
  0xac   :  { %v77_v29 = vadd.f32 %v70_v24, %v69_v23  ;;  %v100_v30 = vsel %vm98_vm0, %v91_v25, 0.0  ;;  %v104_v37 = vsel %vm98_vm0, %v93_v26, 0.0 }
  0xad   :  { %v101_v33 = vadd.f32 %v100_v30, %v99_v28  ;;  %v62_v34 = vpop.xlane.xlu0 %61  ;;  %v64_v35 = vpop.xlane.xlu1 %63 }
  0xae   :  { %v78_v36 = vadd.f32 %v77_v29, %v71_v27  ;;  %v73_v38 = vmul.f32 %v62_v34, %v399_v9  ;;  %v94_v39 = vmul.f32 %v62_v34, %v62_v34  ;;  %v95_v41 = vmul.f32 %v64_v35, %v64_v35 }
  0xaf   :  { %v103_v40 = vadd.f32 %v102_v32, %v101_v33  ;;  %v74_v44 = vmul.f32 %v64_v35, %v401_v10 }
  0xb0   :  { %v79_v42 = vadd.f32 %v78_v36, %v72_v31  ;;  %v106_v43 = vsel %vm98_vm0, %v94_v39, 0.0  ;;  %v108_v49 = vsel %vm98_vm0, %v95_v41, 0.0 }
  0xb1   :  { %v105_v45 = vadd.f32 %v104_v37, %v103_v40  ;;  %v66_v46 = vpop.xlane.xlu0 %65  ;;  %v68_v47 = vpop.xlane.xlu1 %67 }
  0xb2   :  { %v80_v48 = vadd.f32 %v79_v42, %v73_v38  ;;  %v75_v50 = vmul.f32 %v66_v46, %v405_v13  ;;  %v96_v51 = vmul.f32 %v66_v46, %v66_v46  ;;  %v97_v53 = vmul.f32 %v68_v47, %v68_v47 }
  0xb3   :  { %v107_v52 = vadd.f32 %v106_v43, %v105_v45  ;;  %v76_v56 = vmul.f32 %v68_v47, %v407_v14 }
  0xb4   :  { %v81_v54 = vadd.f32 %v80_v48, %v74_v44  ;;  %v110_v55 = vsel %vm98_vm0, %v96_v51, 0.0  ;;  %v112_v59 = vsel %vm98_vm0, %v97_v53, 0.0 }
  0xb5   :  { %v109_v57 = vadd.f32 %v108_v49, %v107_v52 }
  0xb6   :  { %v82_v58 = vadd.f32 %v81_v54, %v75_v50 }
  0xb7   :  { %v111_v60 = vadd.f32 %v110_v55, %v109_v57 }
  0xb8   :  { %v83_v61 = vadd.f32 %v82_v58, %v76_v56 }
  0xb9   :  { %v113_v62 = vadd.f32 %v112_v59, %v111_v60 }
  0xba   :  { %v84_v63 = vrot.slane %v83_v61, 4 }
  0xbb   :  { %114 = vadd.xlane.f32.xlu0 %v113_v62 }
  0xbc   :  { %v85_v1 = vadd.f32 %v84_v63, %v83_v61 }
  0xbe   :  { %v86_v3 = vrot.slane %v85_v1, 2 }
  0xc0   :  { %v87_v4 = vadd.f32 %v86_v3, %v85_v1 }
  0xc2   :  { %v88_v7 = vrot.slane %v87_v4, 1 }
  0xc4   :  { %v427_v8 = vadd.f32 %v88_v7, %v87_v4 }
  0xc6   :  { %v132_v11 = vmul.f32 %v427_v8, %v427_v8 }
  0xc8   :  { %v134_v12 = vsel %vm133_vm1, %v132_v11, 0.0 }
  0xc9   :  { %135 = vadd.xlane.f32.xlu1 %v134_v12 }
 0x148   :  { %v115_v15 = vpop.xlane.xlu0 %114 }
 0x149   :  { %v116_v16 = vrot.slane %v115_v15, 4 }
 0x14b   :  { %v117_v17 = vadd.f32 %v116_v16, %v115_v15 }
 0x14d   :  { %v118_v18 = vrot.slane %v117_v17, 2 }
 0x14f   :  { %v119_v19 = vadd.f32 %v118_v18, %v117_v17 }
 0x151   :  { %v120_v20 = vrot.slane %v119_v19, 1 }
 0x153   :  { %v121_v21 = vadd.f32 %v120_v20, %v119_v19 }
 0x155   :  { %224 = vpush %v121_v21 }
 0x156   :  { %v136_v22 = vpop.xlane.xlu1 %135 }
 0x157   :  { %v137_v23 = vrot.slane %v136_v22, 4 }
 0x159   :  { %v138_v24 = vadd.f32 %v137_v23, %v136_v22 }
 0x15b   :  { %v139_v25 = vrot.slane %v138_v24, 2 }
 0x15d   :  { %v140_v26 = vadd.f32 %v139_v25, %v138_v24 }
 0x15f   :  { %v141_v27 = vrot.slane %v140_v26, 1 }
 0x161   :  { %v142_v28 = vadd.f32 %v141_v27, %v140_v26 }
 0x163   :  { %226 = vpush %v142_v28 }
 0x186   :  { %s225_s0 = spop %224 }
 0x187   :  { %v123_v29 = vstv %s225_s0 }
 0x188   :  { %234 = vrsqrt.f32 %v123_v29  ;;  %vm126_vm2 = vcmp.eq.f32.partialorder %v123_v29, inf  ;;  %v129_v32 = vand.u32 2147483648, %v123_v29  ;;  %vm128_vm3 = vcmp.eq.f32.partialorder %v123_v29, 0.0 }
 0x192   :  { %v235_v30 = vpop.eup %234 }
 0x193   :  { %v125_v31 = vmul.f32 %v235_v30, %v123_v29 }
 0x194   :  { %s227_s1 = spop %226 }
 0x195   :  { %v127_v33 = vsel %vm126_vm2, %v123_v29, %v125_v31  ;;  %v144_v34 = vstv %s227_s1 }
 0x196   :  { %v130_v35 = vsel %vm128_vm3, %v129_v32, %v127_v33  ;;  %236 = vrsqrt.f32 %v144_v34  ;;  %vm147_vm4 = vcmp.eq.f32.partialorder %v144_v34, inf  ;;  %v150_v39 = vand.u32 2147483648, %v144_v34 }
 0x197   :  { %v131_v36 = vmax.f32 %v130_v35, 1e-12  ;;  %vm149_vm5 = vcmp.eq.f32.partialorder %v144_v34, 0.0 }
 0x199   :  { %238 = vrcp.f32 %v131_v36 }
 0x1a0   :  { %v237_v37 = vpop.eup %236 }
 0x1a1   :  { %v146_v38 = vmul.f32 %v237_v37, %v144_v34 }
 0x1a3   :  { %v239_v40 = vpop.eup %238  ;;  %v148_v41 = vsel %vm147_vm4, %v144_v34, %v146_v38 }
 0x1a4   :  { %v151_v42 = vsel %vm149_vm5, %v150_v39, %v148_v41 }
 0x1a5   :  { %v153_v43 = vmul.f32 %v239_v40, %v151_v42 }
 0x1a7   :  { %v154_v44 = vmax.f32 %v153_v43, 1e-12  ;;  %240 = vrcp.f32 %v153_v43  ;;  %160 = vst.msk [vmem:[#allocation8] sm:$0x1] %vm159_vm6, %v153_v43 }
 0x1a9   :  { %v155_v45 = vmul.f32 %v154_v44, %v131_v36 }
 0x1ab   :  { %242 = vrcp.f32 %v155_v45 }
 0x1b1   :  { %v241_v46 = vpop.eup %240 }
 0x1b2   :  { %v163_v47 = vmul.f32 %v241_v46, %v384_v0  ;;  %v164_v48 = vmul.f32 %v241_v46, %v393_v5  ;;  %v165_v49 = vmul.f32 %v241_v46, %v389_v2  ;;  %v166_v50 = vmul.f32 %v241_v46, %v395_v6 }
 0x1b3   :  { %v167_v51 = vmul.f32 %v241_v46, %v399_v9  ;;  %v168_v52 = vmul.f32 %v241_v46, %v401_v10  ;;  %v169_v53 = vmul.f32 %v241_v46, %v405_v13  ;;  %v170_v54 = vmul.f32 %v241_v46, %v407_v14 }
 0x1b4   :  { %171 = vst [vmem:[#allocation5] sm:$0xff] %v163_v47  ;;  %172 = vst [vmem:[#allocation5 + $0x8] sm:$0xff] %v164_v48 }
 0x1b5   :  { %173 = vst [vmem:[#allocation5 + $0x10] sm:$0xff] %v165_v49  ;;  %174 = vst [vmem:[#allocation5 + $0x18] sm:$0xff] %v166_v50  ;;  %v243_v0 = vpop.eup %242 }
 0x1b6   :  { %175 = vst [vmem:[#allocation5 + $0x20] sm:$0xff] %v167_v51  ;;  %176 = vst [vmem:[#allocation5 + $0x28] sm:$0xff] %v168_v52  ;;  %v157_v2 = vmul.f32 %v243_v0, %v427_v8 }
 0x1b7   :  { %177 = vst [vmem:[#allocation5 + $0x30] sm:$0xff] %v169_v53  ;;  %178 = vst [vmem:[#allocation5 + $0x38] sm:$0xff] %v170_v54 }
 0x1b8   :  { %277 = shalt.err (!%p274_p12)
}
 0x1b9   :  { %s278_s14 = scalar_lea.hbm %s504_s2, 1024 }
 0x1ba   :  { %p279_p13 = scmp.ne.s32.totalorder %s504_s2, %s278_s14  ;;  %p282_p0 = scmp.lt.u32.totalorder %s278_s14, %s504_s2 }
 0x1bc   :  { %p284_p1 = pnand %p282_p0, %p279_p13 }
 0x1be   :  { %287 = shalt.err (!%p284_p1)
}
 0x1bf   :  { %190 = dma.vmem_to_hbm [thread:$0]  %s439_s6, 1024, %s504_s2, [#allocation4], %s339_s25, %s339_s25, %s340_s26   ;;  %158 = vst [vmem:[#allocation6] sm:$0x1] %v157_v2 }
 0x1c0   :  { %s288_s21 = scalar_lea.vmem %s441_s8, 16  ;;  %s292_s22 = scalar_lea.vmem %s441_s8, 32 }
 0x1c1   :  { %p289_p2 = scmp.ne.s32.totalorder %s441_s8, %s288_s21  ;;  %p293_p3 = scmp.lt.s32.totalorder %s441_s8, %s441_s8 }
 0x1c2   :  { %p294_p4 = scmp.lt.s32.totalorder %s292_s22, %s288_s21 }
 0x1c4   :  { %p295_p5 = por %p294_p4, %p293_p3 }
 0x1c6   :  { %p296_p6 = pnand %p295_p5, %p289_p2 }
 0x1c8   :  { %299 = shalt.err (!%p296_p6)
}
 0x1c9   :  { %s300_s27 = scalar_lea.hbm %s505_s3, 16 }
 0x1ca   :  { %p301_p7 = scmp.ne.s32.totalorder %s505_s3, %s300_s27  ;;  %p304_p8 = scmp.lt.u32.totalorder %s300_s27, %s505_s3 }
 0x1cc   :  { %p306_p9 = pnand %p304_p8, %p301_p7 }
 0x1ce   :  { %309 = shalt.err (!%p306_p9)
}
 0x1cf   :  { %200 = dma.vmem_to_hbm [thread:$0]  %s441_s8, 16, %s505_s3, [#allocation7]  }
 0x1d0   :  { %s310_s0 = scalar_lea.vmem %s464_s10, 16  ;;  %s314_s1 = scalar_lea.vmem %s464_s10, 32 }
 0x1d1   :  { %p311_p10 = scmp.ne.s32.totalorder %s464_s10, %s310_s0  ;;  %p315_p11 = scmp.lt.s32.totalorder %s464_s10, %s464_s10 }
 0x1d2   :  { %p316_p12 = scmp.lt.s32.totalorder %s314_s1, %s310_s0 }
 0x1d4   :  { %p317_p13 = por %p316_p12, %p315_p11 }
 0x1d6   :  { %p318_p0 = pnand %p317_p13, %p311_p10 }
 0x1d8   :  { %321 = shalt.err (!%p318_p0)
}
 0x1d9   :  { %s322_s7 = scalar_lea.hbm %s506_s4, 16 }
 0x1da   :  { %p323_p1 = scmp.ne.s32.totalorder %s506_s4, %s322_s7  ;;  %p326_p2 = scmp.lt.u32.totalorder %s322_s7, %s506_s4 }
 0x1dc   :  { %p328_p3 = pnand %p326_p2, %p323_p1 }
 0x1de   :  { %331 = shalt.err (!%p328_p3)
}
 0x1df   :  { %210 = dma.vmem_to_hbm [thread:$0]  %s464_s10, 16, %s506_s4, [#allocation7]  }
 0x1e0   :  { %334 = dma.done.wait [#allocation4], 1024  }
 0x1e1   :  { %335 = vsyncadd [#allocation4], 4294966272 }
 0x1e2   :  { %336 = dma.done.wait [#allocation7], 32  }
 0x1e3   :  { %337 = vsyncadd [#allocation7], 4294967264 }
 0x1e4   :  { %220 = vsyncpa [#allocation3], 1 }
 0x1e5   :  { %221 = vsyncpa [#allocation4], 1 }
 0x1e6   :  { %222 = vsyncpa [#allocation7], 1 }

</bundles_post_ra>
